<compile_context>
chip_gen: v7x
topology: tpu7x:2x2x1
jax: 0.10.0
libtpu: 0.0.40
codegen_flags: <defaults>
</compile_context>

<pallas_src>
import math
import numpy as np
import jax
import jax.numpy as jnp
from jax import lax
from jax.experimental import pallas as pl
from jax.experimental.pallas import tpu as pltpu


def _cdiv(a, b):
    return -(-a // b)


def _round_up(a, b):
    return _cdiv(a, b) * b


def _preferred_min_tiles():
    """v7x has 2 TensorCores per chip -> give each core a tile; v5e/v6e want 1 big tile."""
    try:
        d = jax.devices()[0]
        if d.platform == "tpu" and "v7" in str(getattr(d, "device_kind", "")).lower():
            return 2
    except Exception:
        pass
    return 1


def _vmem_budget_bytes():
    """Per-tile VMEM block budget, sized from the chip's physical VMEM when known."""
    try:
        d = jax.devices()[0]
        if d.platform == "tpu":
            cap = getattr(pltpu.get_tpu_info(), "vmem_capacity_bytes", None)
            if cap:
                return max(16 << 20, int(cap) * 45 // 100)   # leave pipeline headroom
    except Exception:
        pass
    return 28 << 20   # conservative default: fits v5e / v6e / v7x


def _plan_tiles(P, per_pixel_bytes, min_tiles, budget_bytes):
    """Largest lane-dense (multiple-of-128) pixel tile fitting the VMEM budget."""
    P128 = _round_up(max(P, 1), 128)
    cap = max(128, (budget_bytes // max(per_pixel_bytes, 1)) // 128 * 128)
    if min_tiles > 1:
        target = _round_up(_cdiv(P128, min_tiles), 128)   # split across TensorCores
        tp = min(cap, target)
    else:
        tp = min(cap, P128)
    tp = max(tp, 128)
    grid = _cdiv(P128, tp)
    return tp, grid, grid * tp


def _make_inpaint_kernel(steps, C, continous, use_noise, unroll):
    """Kernel over one (C, TP) pixel tile; runs the whole DDIM loop in VMEM."""

    def kernel(mb_ref, img_ref, mask_ref, noise_ref, out_ref):
        img = img_ref[...]            # (C, TP)  clean image, pixels on lanes
        mk = mask_ref[...]            # (1, TP)  1 = known pixel, 0 = inpaint
        inv_mk = 1.0 - mk
        masked_img = mk * img         # loop-invariant, hoisted out of the step loop

        # x_T: standard normal on the unknown region, clean image on known region.
        x0 = masked_img + inv_mk * noise_ref[0]
        if continous:
            out_ref[0] = x0.astype(out_ref.dtype)

        def body(s, x):
            mb = mb_ref[s]            # (C, C+2): [M_s | c_e*b | sigma_s]
            # x_prev[co, p] = sum_ci M_s[co, ci] * x[ci, p] + c_e*b[co] (+ sigma*z)
            # C broadcast FMAs on the VPU (MXU is pointless at C=4).
            acc = x[0:1, :] * mb[:, 0:1]
            for ci in range(1, C):
                acc = acc + x[ci:ci + 1, :] * mb[:, ci:ci + 1]
            acc = acc + mb[:, C:C + 1]                         # folded bias c_e*b
            if use_noise:
                acc = acc + mb[:, C + 1:C + 2] * noise_ref[1 + s]
            x_new = masked_img + inv_mk * acc                  # re-impose known pixels
            if continous:
                out_ref[s + 1] = x_new.astype(out_ref.dtype)
            return x_new

        x_fin = lax.fori_loop(0, steps, body, x0, unroll=unroll)
        if not continous:
            out_ref[...] = x_fin.astype(out_ref.dtype)

    return kernel


def inpainting(mask, image, continous, condition_ddim, steps, eta, w, b, seed=0):
    """JAX/Pallas equivalent of InpaintingModule.forward.

    mask:  (N, 1, H, W) float, 1.0 = keep original pixel, 0.0 = inpaint.
    image: (N, C, H, W) float (NCHW, like PyTorch).
    w, b:  stand-in 1x1-conv eps-model parameters, w: (C_in, C_out), b: (C,).
    Returns (N, C, H, W) float32, or (steps+1, N, C, H, W) bfloat16 if `continous`.
    """
    assert steps >= 1
    N, C, H, W = image.shape
    P = N * H * W

    # --- host-folded DDIM coefficients: per-step table [M_s | c_e*b | sigma_s] ---
    # x_{t-1} = (c_x*I + c_e*W^T) x_t + c_e*b + sigma*z ;  eps(x) = W^T x + b.
    betas = np.linspace(1e-4, 2e-2, steps, dtype=np.float64)
    alphas_cumprod = np.cumprod(1.0 - betas)
    W_np = np.asarray(w, dtype=np.float64).reshape(C, C)     # (C_in, C_out)
    b_np = np.asarray(b, dtype=np.float64).reshape(C)
    eye = np.eye(C, dtype=np.float64)

    table = np.zeros((steps, C, C + 2), dtype=np.float32)
    use_noise = False
    for s in range(steps):                 # s = 0..steps-1  <->  t = steps-1..0
        t = steps - 1 - s
        a_t = float(alphas_cumprod[t])
        a_prev = float(alphas_cumprod[t - 1]) if t > 0 else 1.0
        if condition_ddim and t > 0:
            sigma = float(eta) * math.sqrt(
                max((1.0 - a_prev) / (1.0 - a_t) * (1.0 - a_t / a_prev), 0.0))
        else:
            sigma = 0.0
        coef_eps = math.sqrt(max(1.0 - a_prev - sigma * sigma, 0.0))
        sqrt_at = math.sqrt(a_t)
        c_x = math.sqrt(a_prev) / sqrt_at
        c_e = coef_eps - math.sqrt(a_prev) * math.sqrt(1.0 - a_t) / sqrt_at
        if sigma > 0.0:
            use_noise = True
        table[s, :, :C] = c_x * eye + c_e * W_np.T            # M_s[co, ci]
        table[s, :, C] = c_e * b_np                           # folded bias
        table[s, :, C + 1] = sigma                            # noise scale
    table_j = jnp.asarray(table)

    # --- chip-aware tile planning (sized from the actual per-pixel block bytes) ---
    S = steps + 1 if use_noise else 1                         # noise planes streamed in
    out_dtype = jnp.bfloat16 if continous else jnp.float32
    out_pp = (steps + 1) * C * 2 if continous else C * 4      # bytes/pixel of output block
    in_pp = C * 4 + 4 + S * C * 4                             # img + mask + noise
    per_pixel = 2 * (in_pp + out_pp) + 8 * C * 4              # double-buffered blocks + working set

    TP, grid, P_pad = _plan_tiles(P, per_pixel, _preferred_min_tiles(), _vmem_budget_bytes())

    est_bytes = per_pixel * TP + 2 * table.size * 4 + (2 << 20)
    vmem_limit = int(min(max(32 << 20, est_bytes * 5 // 4), 100 << 20))

    # --- pixels-on-lanes layout: NCHW -> (C, N*H*W); mask stays single-channel ---
    img_cp = jnp.transpose(image, (1, 0, 2, 3)).reshape(C, P).astype(jnp.float32)
    mask_cp = mask.astype(jnp.float32).reshape(1, P)
    if P_pad > P:
        img_cp = jnp.pad(img_cp, ((0, 0), (0, P_pad - P)))
        # padded pixels are "known" with value 0 -> never touched by the recurrence
        mask_cp = jnp.pad(mask_cp, ((0, 0), (0, P_pad - P)), constant_values=1.0)

    # Host-side gaussian noise (deterministic in `seed`, independent of tiling).
    noise = jax.random.normal(jax.random.PRNGKey(int(seed)), (S, C, P_pad), dtype=jnp.float32)

    unroll = steps if steps <= 4 else 2
    kernel = _make_inpaint_kernel(steps, C, bool(continous), use_noise, unroll)

    if continous:
        out_shape = jax.ShapeDtypeStruct((steps + 1, C, P_pad), out_dtype)
        out_spec = pl.BlockSpec((steps + 1, C, TP), lambda i: (0, 0, i))
    else:
        out_shape = jax.ShapeDtypeStruct((C, P_pad), out_dtype)
        out_spec = pl.BlockSpec((C, TP), lambda i: (0, i))

    out = pl.pallas_call(
        kernel,
        out_shape=out_shape,
        grid=(grid,),
        in_specs=[
            pl.BlockSpec((steps, C, C + 2), lambda i: (0, 0, 0)),   # folded DDIM / eps-model table
            pl.BlockSpec((C, TP), lambda i: (0, i)),                # clean image
            pl.BlockSpec((1, TP), lambda i: (0, i)),                # mask plane
            pl.BlockSpec((S, C, TP), lambda i: (0, 0, i)),          # gaussian noise
        ],
        out_specs=out_spec,
        compiler_params=pltpu.CompilerParams(
            dimension_semantics=("parallel",),
            vmem_limit_bytes=vmem_limit,
        ),
    )(table_j, img_cp, mask_cp, noise)

    if continous:
        traj = out[:, :, :P].reshape(steps + 1, C, N, H, W)
        return jnp.transpose(traj, (0, 2, 1, 3, 4))
    return jnp.transpose(out[:, :P].reshape(C, N, H, W), (1, 0, 2, 3))


if __name__ == "__main__":
    # Deterministic setup at small shapes.
    N, C, H, W = 2, 4, 16, 16
    key = jax.random.PRNGKey(0)
    k_img, k_mask, k_w, k_b = jax.random.split(key, 4)

    image = jax.random.normal(k_img, (N, C, H, W), dtype=jnp.float32)
    # Binary mask: 1 = known pixel, 0 = region to inpaint.
    mask = (jax.random.uniform(k_mask, (N, 1, H, W)) > 0.5).astype(jnp.float32)

    # Deterministic eps-model parameters (1x1 conv: weight (C_in, C_out), bias (C,)).
    w = 0.05 * jax.random.normal(k_w, (C, C), dtype=jnp.float32)
    b = 0.01 * jax.random.normal(k_b, (C,), dtype=jnp.float32)

    # Stochastic DDIM path (sigma > 0 -> noise planes streamed in).
    out = inpainting(mask, image, continous=False, condition_ddim=True,
                     steps=4, eta=0.5, w=w, b=b, seed=1234)
    out = jax.block_until_ready(out)
    assert out.shape == (N, C, H, W)
    assert bool(jnp.all(jnp.isfinite(out)))
    # Known pixels are re-imposed from the clean image every step.
    assert bool(jnp.allclose(out * mask, image * mask, atol=1e-5))

    # Deterministic DDIM path + full trajectory (bf16 writeback).
    traj = inpainting(mask, image, continous=True, condition_ddim=False,
                      steps=4, eta=0.0, w=w, b=b, seed=1234)
    traj = jax.block_until_ready(traj)
    assert traj.shape == (5, N, C, H, W)
    assert bool(jnp.all(jnp.isfinite(traj)))
    # bf16 trajectory -> ~0.4% relative rounding on the known pixels.
    assert bool(jnp.allclose(traj[-1].astype(jnp.float32) * mask, image * mask, atol=2e-2))

    print("KERNEL_OK")
</pallas_src>

<mosaic_0001>
module attributes {stable_mosaic.version = 11 : i64} {
  func.func @kernel(%arg0: i32, %arg1: memref<4x4x6xf32, #tpu.memory_space<vmem>>, %arg2: memref<4x512xf32, #tpu.memory_space<vmem>>, %arg3: memref<1x512xf32, #tpu.memory_space<vmem>>, %arg4: memref<5x4x512xf32, #tpu.memory_space<vmem>>, %arg5: memref<4x512xf32, #tpu.memory_space<vmem>>) attributes {dimension_semantics = [#tpu.dimension_semantics<parallel>], iteration_bounds = array<i64: 1>, scalar_prefetch = 0 : i64, scratch_operands = 0 : i64, tpu.core_type = #tpu.core_type<tc>, window_params = [{pipeline_mode = #tpu.pipeline_mode<synchronous>, transform_indices = @transform_0, window_bounds = array<i64: 4, 4, 6>}, {transform_indices = @transform_1, window_bounds = array<i64: 4, 512>}, {transform_indices = @transform_2, window_bounds = array<i64: 1, 512>}, {transform_indices = @transform_3, window_bounds = array<i64: 5, 4, 512>}, {transform_indices = @transform_4, window_bounds = array<i64: 4, 512>}]} {
    %c0 = arith.constant 0 : index
    %c0_0 = arith.constant 0 : index
    %0 = vector.load %arg2[%c0, %c0_0] : memref<4x512xf32, #tpu.memory_space<vmem>>, vector<4x512xf32>
    %c0_1 = arith.constant 0 : index
    %c0_2 = arith.constant 0 : index
    %1 = vector.load %arg3[%c0_1, %c0_2] : memref<1x512xf32, #tpu.memory_space<vmem>>, vector<1x512xf32>
    %cst = arith.constant 1.000000e+00 : f32
    %2 = vector.broadcast %cst : f32 to vector<1x512xf32>
    %3 = arith.subf %2, %1 : vector<1x512xf32>
    %4 = vector.broadcast %1 : vector<1x512xf32> to vector<4x512xf32>
    %5 = arith.mulf %4, %0 : vector<4x512xf32>
    %c0_3 = arith.constant 0 : index
    %c0_4 = arith.constant 0 : index
    %c0_5 = arith.constant 0 : index
    %6 = vector.load %arg4[%c0_3, %c0_4, %c0_5] : memref<5x4x512xf32, #tpu.memory_space<vmem>>, vector<1x4x512xf32>
    %7 = vector.shape_cast %6 : vector<1x4x512xf32> to vector<4x512xf32>
    %8 = vector.broadcast %3 : vector<1x512xf32> to vector<4x512xf32>
    %9 = arith.mulf %8, %7 : vector<4x512xf32>
    %10 = arith.addf %5, %9 : vector<4x512xf32>
    %c0_i32 = arith.constant 0 : i32
    %11 = arith.index_cast %c0_i32 : i32 to index
    %c0_6 = arith.constant 0 : index
    %c0_7 = arith.constant 0 : index
    %12 = vector.load %arg1[%11, %c0_6, %c0_7] : memref<4x4x6xf32, #tpu.memory_space<vmem>>, vector<1x4x6xf32>
    %13 = vector.shape_cast %12 : vector<1x4x6xf32> to vector<4x6xf32>
    %14 = vector.extract_strided_slice %10 {offsets = [0, 0], sizes = [1, 512], strides = [1, 1]} : vector<4x512xf32> to vector<1x512xf32>
    %15 = vector.extract_strided_slice %13 {offsets = [0, 0], sizes = [4, 1], strides = [1, 1]} : vector<4x6xf32> to vector<4x1xf32>
    %16 = vector.broadcast %14 : vector<1x512xf32> to vector<4x512xf32>
    %17 = vector.broadcast %15 : vector<4x1xf32> to vector<4x512xf32>
    %18 = arith.mulf %16, %17 : vector<4x512xf32>
    %19 = vector.extract_strided_slice %10 {offsets = [1, 0], sizes = [1, 512], strides = [1, 1]} : vector<4x512xf32> to vector<1x512xf32>
    %20 = vector.extract_strided_slice %13 {offsets = [0, 1], sizes = [4, 1], strides = [1, 1]} : vector<4x6xf32> to vector<4x1xf32>
    %21 = vector.broadcast %19 : vector<1x512xf32> to vector<4x512xf32>
    %22 = vector.broadcast %20 : vector<4x1xf32> to vector<4x512xf32>
    %23 = arith.mulf %21, %22 : vector<4x512xf32>
    %24 = arith.addf %18, %23 : vector<4x512xf32>
    %25 = vector.extract_strided_slice %10 {offsets = [2, 0], sizes = [1, 512], strides = [1, 1]} : vector<4x512xf32> to vector<1x512xf32>
    %26 = vector.extract_strided_slice %13 {offsets = [0, 2], sizes = [4, 1], strides = [1, 1]} : vector<4x6xf32> to vector<4x1xf32>
    %27 = vector.broadcast %25 : vector<1x512xf32> to vector<4x512xf32>
    %28 = vector.broadcast %26 : vector<4x1xf32> to vector<4x512xf32>
    %29 = arith.mulf %27, %28 : vector<4x512xf32>
    %30 = arith.addf %24, %29 : vector<4x512xf32>
    %31 = vector.extract_strided_slice %10 {offsets = [3, 0], sizes = [1, 512], strides = [1, 1]} : vector<4x512xf32> to vector<1x512xf32>
    %32 = vector.extract_strided_slice %13 {offsets = [0, 3], sizes = [4, 1], strides = [1, 1]} : vector<4x6xf32> to vector<4x1xf32>
    %33 = vector.broadcast %31 : vector<1x512xf32> to vector<4x512xf32>
    %34 = vector.broadcast %32 : vector<4x1xf32> to vector<4x512xf32>
    %35 = arith.mulf %33, %34 : vector<4x512xf32>
    %36 = arith.addf %30, %35 : vector<4x512xf32>
    %37 = vector.extract_strided_slice %13 {offsets = [0, 4], sizes = [4, 1], strides = [1, 1]} : vector<4x6xf32> to vector<4x1xf32>
    %38 = vector.broadcast %37 : vector<4x1xf32> to vector<4x512xf32>
    %39 = arith.addf %36, %38 : vector<4x512xf32>
    %40 = vector.extract_strided_slice %13 {offsets = [0, 5], sizes = [4, 1], strides = [1, 1]} : vector<4x6xf32> to vector<4x1xf32>
    %c1_i32 = arith.constant 1 : i32
    %41 = arith.addi %c1_i32, %c0_i32 : i32
    %42 = arith.index_cast %41 : i32 to index
    %c0_8 = arith.constant 0 : index
    %c0_9 = arith.constant 0 : index
    %43 = vector.load %arg4[%42, %c0_8, %c0_9] : memref<5x4x512xf32, #tpu.memory_space<vmem>>, vector<1x4x512xf32>
    %44 = vector.shape_cast %43 : vector<1x4x512xf32> to vector<4x512xf32>
    %45 = vector.broadcast %40 : vector<4x1xf32> to vector<4x512xf32>
    %46 = arith.mulf %45, %44 : vector<4x512xf32>
    %47 = arith.addf %39, %46 : vector<4x512xf32>
    %48 = vector.broadcast %3 : vector<1x512xf32> to vector<4x512xf32>
    %49 = arith.mulf %48, %47 : vector<4x512xf32>
    %50 = arith.addf %5, %49 : vector<4x512xf32>
    %c1_i32_10 = arith.constant 1 : i32
    %51 = arith.index_cast %c1_i32_10 : i32 to index
    %c0_11 = arith.constant 0 : index
    %c0_12 = arith.constant 0 : index
    %52 = vector.load %arg1[%51, %c0_11, %c0_12] : memref<4x4x6xf32, #tpu.memory_space<vmem>>, vector<1x4x6xf32>
    %53 = vector.shape_cast %52 : vector<1x4x6xf32> to vector<4x6xf32>
    %54 = vector.extract_strided_slice %50 {offsets = [0, 0], sizes = [1, 512], strides = [1, 1]} : vector<4x512xf32> to vector<1x512xf32>
    %55 = vector.extract_strided_slice %53 {offsets = [0, 0], sizes = [4, 1], strides = [1, 1]} : vector<4x6xf32> to vector<4x1xf32>
    %56 = vector.broadcast %54 : vector<1x512xf32> to vector<4x512xf32>
    %57 = vector.broadcast %55 : vector<4x1xf32> to vector<4x512xf32>
    %58 = arith.mulf %56, %57 : vector<4x512xf32>
    %59 = vector.extract_strided_slice %50 {offsets = [1, 0], sizes = [1, 512], strides = [1, 1]} : vector<4x512xf32> to vector<1x512xf32>
    %60 = vector.extract_strided_slice %53 {offsets = [0, 1], sizes = [4, 1], strides = [1, 1]} : vector<4x6xf32> to vector<4x1xf32>
    %61 = vector.broadcast %59 : vector<1x512xf32> to vector<4x512xf32>
    %62 = vector.broadcast %60 : vector<4x1xf32> to vector<4x512xf32>
    %63 = arith.mulf %61, %62 : vector<4x512xf32>
    %64 = arith.addf %58, %63 : vector<4x512xf32>
    %65 = vector.extract_strided_slice %50 {offsets = [2, 0], sizes = [1, 512], strides = [1, 1]} : vector<4x512xf32> to vector<1x512xf32>
    %66 = vector.extract_strided_slice %53 {offsets = [0, 2], sizes = [4, 1], strides = [1, 1]} : vector<4x6xf32> to vector<4x1xf32>
    %67 = vector.broadcast %65 : vector<1x512xf32> to vector<4x512xf32>
    %68 = vector.broadcast %66 : vector<4x1xf32> to vector<4x512xf32>
    %69 = arith.mulf %67, %68 : vector<4x512xf32>
    %70 = arith.addf %64, %69 : vector<4x512xf32>
    %71 = vector.extract_strided_slice %50 {offsets = [3, 0], sizes = [1, 512], strides = [1, 1]} : vector<4x512xf32> to vector<1x512xf32>
    %72 = vector.extract_strided_slice %53 {offsets = [0, 3], sizes = [4, 1], strides = [1, 1]} : vector<4x6xf32> to vector<4x1xf32>
    %73 = vector.broadcast %71 : vector<1x512xf32> to vector<4x512xf32>
    %74 = vector.broadcast %72 : vector<4x1xf32> to vector<4x512xf32>
    %75 = arith.mulf %73, %74 : vector<4x512xf32>
    %76 = arith.addf %70, %75 : vector<4x512xf32>
    %77 = vector.extract_strided_slice %53 {offsets = [0, 4], sizes = [4, 1], strides = [1, 1]} : vector<4x6xf32> to vector<4x1xf32>
    %78 = vector.broadcast %77 : vector<4x1xf32> to vector<4x512xf32>
    %79 = arith.addf %76, %78 : vector<4x512xf32>
    %80 = vector.extract_strided_slice %53 {offsets = [0, 5], sizes = [4, 1], strides = [1, 1]} : vector<4x6xf32> to vector<4x1xf32>
    %c1_i32_13 = arith.constant 1 : i32
    %81 = arith.addi %c1_i32_13, %c1_i32_10 : i32
    %82 = arith.index_cast %81 : i32 to index
    %c0_14 = arith.constant 0 : index
    %c0_15 = arith.constant 0 : index
    %83 = vector.load %arg4[%82, %c0_14, %c0_15] : memref<5x4x512xf32, #tpu.memory_space<vmem>>, vector<1x4x512xf32>
    %84 = vector.shape_cast %83 : vector<1x4x512xf32> to vector<4x512xf32>
    %85 = vector.broadcast %80 : vector<4x1xf32> to vector<4x512xf32>
    %86 = arith.mulf %85, %84 : vector<4x512xf32>
    %87 = arith.addf %79, %86 : vector<4x512xf32>
    %88 = vector.broadcast %3 : vector<1x512xf32> to vector<4x512xf32>
    %89 = arith.mulf %88, %87 : vector<4x512xf32>
    %90 = arith.addf %5, %89 : vector<4x512xf32>
    %c2_i32 = arith.constant 2 : i32
    %91 = arith.index_cast %c2_i32 : i32 to index
    %c0_16 = arith.constant 0 : index
    %c0_17 = arith.constant 0 : index
    %92 = vector.load %arg1[%91, %c0_16, %c0_17] : memref<4x4x6xf32, #tpu.memory_space<vmem>>, vector<1x4x6xf32>
    %93 = vector.shape_cast %92 : vector<1x4x6xf32> to vector<4x6xf32>
    %94 = vector.extract_strided_slice %90 {offsets = [0, 0], sizes = [1, 512], strides = [1, 1]} : vector<4x512xf32> to vector<1x512xf32>
    %95 = vector.extract_strided_slice %93 {offsets = [0, 0], sizes = [4, 1], strides = [1, 1]} : vector<4x6xf32> to vector<4x1xf32>
    %96 = vector.broadcast %94 : vector<1x512xf32> to vector<4x512xf32>
    %97 = vector.broadcast %95 : vector<4x1xf32> to vector<4x512xf32>
    %98 = arith.mulf %96, %97 : vector<4x512xf32>
    %99 = vector.extract_strided_slice %90 {offsets = [1, 0], sizes = [1, 512], strides = [1, 1]} : vector<4x512xf32> to vector<1x512xf32>
    %100 = vector.extract_strided_slice %93 {offsets = [0, 1], sizes = [4, 1], strides = [1, 1]} : vector<4x6xf32> to vector<4x1xf32>
    %101 = vector.broadcast %99 : vector<1x512xf32> to vector<4x512xf32>
    %102 = vector.broadcast %100 : vector<4x1xf32> to vector<4x512xf32>
    %103 = arith.mulf %101, %102 : vector<4x512xf32>
    %104 = arith.addf %98, %103 : vector<4x512xf32>
    %105 = vector.extract_strided_slice %90 {offsets = [2, 0], sizes = [1, 512], strides = [1, 1]} : vector<4x512xf32> to vector<1x512xf32>
    %106 = vector.extract_strided_slice %93 {offsets = [0, 2], sizes = [4, 1], strides = [1, 1]} : vector<4x6xf32> to vector<4x1xf32>
    %107 = vector.broadcast %105 : vector<1x512xf32> to vector<4x512xf32>
    %108 = vector.broadcast %106 : vector<4x1xf32> to vector<4x512xf32>
    %109 = arith.mulf %107, %108 : vector<4x512xf32>
    %110 = arith.addf %104, %109 : vector<4x512xf32>
    %111 = vector.extract_strided_slice %90 {offsets = [3, 0], sizes = [1, 512], strides = [1, 1]} : vector<4x512xf32> to vector<1x512xf32>
    %112 = vector.extract_strided_slice %93 {offsets = [0, 3], sizes = [4, 1], strides = [1, 1]} : vector<4x6xf32> to vector<4x1xf32>
    %113 = vector.broadcast %111 : vector<1x512xf32> to vector<4x512xf32>
    %114 = vector.broadcast %112 : vector<4x1xf32> to vector<4x512xf32>
    %115 = arith.mulf %113, %114 : vector<4x512xf32>
    %116 = arith.addf %110, %115 : vector<4x512xf32>
    %117 = vector.extract_strided_slice %93 {offsets = [0, 4], sizes = [4, 1], strides = [1, 1]} : vector<4x6xf32> to vector<4x1xf32>
    %118 = vector.broadcast %117 : vector<4x1xf32> to vector<4x512xf32>
    %119 = arith.addf %116, %118 : vector<4x512xf32>
    %120 = vector.extract_strided_slice %93 {offsets = [0, 5], sizes = [4, 1], strides = [1, 1]} : vector<4x6xf32> to vector<4x1xf32>
    %c1_i32_18 = arith.constant 1 : i32
    %121 = arith.addi %c1_i32_18, %c2_i32 : i32
    %122 = arith.index_cast %121 : i32 to index
    %c0_19 = arith.constant 0 : index
    %c0_20 = arith.constant 0 : index
    %123 = vector.load %arg4[%122, %c0_19, %c0_20] : memref<5x4x512xf32, #tpu.memory_space<vmem>>, vector<1x4x512xf32>
    %124 = vector.shape_cast %123 : vector<1x4x512xf32> to vector<4x512xf32>
    %125 = vector.broadcast %120 : vector<4x1xf32> to vector<4x512xf32>
    %126 = arith.mulf %125, %124 : vector<4x512xf32>
    %127 = arith.addf %119, %126 : vector<4x512xf32>
    %128 = vector.broadcast %3 : vector<1x512xf32> to vector<4x512xf32>
    %129 = arith.mulf %128, %127 : vector<4x512xf32>
    %130 = arith.addf %5, %129 : vector<4x512xf32>
    %c3_i32 = arith.constant 3 : i32
    %131 = arith.index_cast %c3_i32 : i32 to index
    %c0_21 = arith.constant 0 : index
    %c0_22 = arith.constant 0 : index
    %132 = vector.load %arg1[%131, %c0_21, %c0_22] : memref<4x4x6xf32, #tpu.memory_space<vmem>>, vector<1x4x6xf32>
    %133 = vector.shape_cast %132 : vector<1x4x6xf32> to vector<4x6xf32>
    %134 = vector.extract_strided_slice %130 {offsets = [0, 0], sizes = [1, 512], strides = [1, 1]} : vector<4x512xf32> to vector<1x512xf32>
    %135 = vector.extract_strided_slice %133 {offsets = [0, 0], sizes = [4, 1], strides = [1, 1]} : vector<4x6xf32> to vector<4x1xf32>
    %136 = vector.broadcast %134 : vector<1x512xf32> to vector<4x512xf32>
    %137 = vector.broadcast %135 : vector<4x1xf32> to vector<4x512xf32>
    %138 = arith.mulf %136, %137 : vector<4x512xf32>
    %139 = vector.extract_strided_slice %130 {offsets = [1, 0], sizes = [1, 512], strides = [1, 1]} : vector<4x512xf32> to vector<1x512xf32>
    %140 = vector.extract_strided_slice %133 {offsets = [0, 1], sizes = [4, 1], strides = [1, 1]} : vector<4x6xf32> to vector<4x1xf32>
    %141 = vector.broadcast %139 : vector<1x512xf32> to vector<4x512xf32>
    %142 = vector.broadcast %140 : vector<4x1xf32> to vector<4x512xf32>
    %143 = arith.mulf %141, %142 : vector<4x512xf32>
    %144 = arith.addf %138, %143 : vector<4x512xf32>
    %145 = vector.extract_strided_slice %130 {offsets = [2, 0], sizes = [1, 512], strides = [1, 1]} : vector<4x512xf32> to vector<1x512xf32>
    %146 = vector.extract_strided_slice %133 {offsets = [0, 2], sizes = [4, 1], strides = [1, 1]} : vector<4x6xf32> to vector<4x1xf32>
    %147 = vector.broadcast %145 : vector<1x512xf32> to vector<4x512xf32>
    %148 = vector.broadcast %146 : vector<4x1xf32> to vector<4x512xf32>
    %149 = arith.mulf %147, %148 : vector<4x512xf32>
    %150 = arith.addf %144, %149 : vector<4x512xf32>
    %151 = vector.extract_strided_slice %130 {offsets = [3, 0], sizes = [1, 512], strides = [1, 1]} : vector<4x512xf32> to vector<1x512xf32>
    %152 = vector.extract_strided_slice %133 {offsets = [0, 3], sizes = [4, 1], strides = [1, 1]} : vector<4x6xf32> to vector<4x1xf32>
    %153 = vector.broadcast %151 : vector<1x512xf32> to vector<4x512xf32>
    %154 = vector.broadcast %152 : vector<4x1xf32> to vector<4x512xf32>
    %155 = arith.mulf %153, %154 : vector<4x512xf32>
    %156 = arith.addf %150, %155 : vector<4x512xf32>
    %157 = vector.extract_strided_slice %133 {offsets = [0, 4], sizes = [4, 1], strides = [1, 1]} : vector<4x6xf32> to vector<4x1xf32>
    %158 = vector.broadcast %157 : vector<4x1xf32> to vector<4x512xf32>
    %159 = arith.addf %156, %158 : vector<4x512xf32>
    %160 = vector.extract_strided_slice %133 {offsets = [0, 5], sizes = [4, 1], strides = [1, 1]} : vector<4x6xf32> to vector<4x1xf32>
    %c1_i32_23 = arith.constant 1 : i32
    %161 = arith.addi %c1_i32_23, %c3_i32 : i32
    %162 = arith.index_cast %161 : i32 to index
    %c0_24 = arith.constant 0 : index
    %c0_25 = arith.constant 0 : index
    %163 = vector.load %arg4[%162, %c0_24, %c0_25] : memref<5x4x512xf32, #tpu.memory_space<vmem>>, vector<1x4x512xf32>
    %164 = vector.shape_cast %163 : vector<1x4x512xf32> to vector<4x512xf32>
    %165 = vector.broadcast %160 : vector<4x1xf32> to vector<4x512xf32>
    %166 = arith.mulf %165, %164 : vector<4x512xf32>
    %167 = arith.addf %159, %166 : vector<4x512xf32>
    %168 = vector.broadcast %3 : vector<1x512xf32> to vector<4x512xf32>
    %169 = arith.mulf %168, %167 : vector<4x512xf32>
    %170 = arith.addf %5, %169 : vector<4x512xf32>
    %c4_i32 = arith.constant 4 : i32
    %c0_26 = arith.constant 0 : index
    %c0_27 = arith.constant 0 : index
    %171 = vector.load %arg5[%c0_26, %c0_27] : memref<4x512xf32, #tpu.memory_space<vmem>>, vector<4x512xf32>
    tpu.vector_store %arg5[%c0_26, %c0_27], %170 {strides = array<i32>} : memref<4x512xf32, #tpu.memory_space<vmem>>, vector<4x512xf32>,
    return
  }
  func.func @transform_0(%arg0: i32) -> (i32, i32, i32) {
    %c0_i32 = arith.constant 0 : i32
    %c0_i32_0 = arith.constant 0 : i32
    %c0_i32_1 = arith.constant 0 : i32
    %c0_i32_2 = arith.constant 0 : i32
    return %c0_i32, %c0_i32_0, %c0_i32_1 : i32, i32, i32
  }
  func.func @transform_1(%arg0: i32) -> (i32, i32) {
    %c0_i32 = arith.constant 0 : i32
    %c0_i32_0 = arith.constant 0 : i32
    return %c0_i32, %arg0 : i32, i32
  }
  func.func @transform_2(%arg0: i32) -> (i32, i32) {
    %c0_i32 = arith.constant 0 : i32
    %c0_i32_0 = arith.constant 0 : i32
    return %c0_i32, %arg0 : i32, i32
  }
  func.func @transform_3(%arg0: i32) -> (i32, i32, i32) {
    %c0_i32 = arith.constant 0 : i32
    %c0_i32_0 = arith.constant 0 : i32
    %c0_i32_1 = arith.constant 0 : i32
    return %c0_i32, %c0_i32_0, %arg0 : i32, i32, i32
  }
  func.func @transform_4(%arg0: i32) -> (i32, i32) {
    %c0_i32 = arith.constant 0 : i32
    %c0_i32_0 = arith.constant 0 : i32
    return %c0_i32, %arg0 : i32, i32
  }
}

</mosaic_0001>

<bundles_post_ra>
// kernel: tpu_custom_call.1
= control target key start
LH: loop header
LB: loop body
LE: loop exit
PB: predicated region body
PF: predicated region fallthrough
CT: control target
= control target key end

     0   :  { %9 = vsyncpa [#allocation3], 0  ;;  %s1123_s0 = inlined_call_operand.hbm [shape: f32[4,4,6], index: 0, kind: input, shape index: {}]   ;;  %s1124_s1 = inlined_call_operand.hbm [shape: f32[4,512], index: 1, kind: input, shape index: {}]   ;;  %s1125_s2 = inlined_call_operand.vmem [shape: f32[1,512], index: 2, kind: input, shape index: {}]   ;;  %s1126_s3 = inlined_call_operand.hbm [shape: f32[5,4,512], index: 3, kind: input, shape index: {}]   ;;  %s1127_s4 = inlined_call_operand.hbm [shape: f32[4,512], index: 4, kind: output, shape index: {}]  }
   0x1   :  { %10 = vsyncpa [#allocation6], 0 }
   0x2   :  { %11 = vsyncpa [#allocation4], 0  ;;  %s890_s15 = smov [#allocation5]   ;;  %s891_s17 = smov [#allocation2]  }
   0x3   :  { %s30_s16 = sshll.u32 %s890_s15, 4  ;;  %s17_s18 = sshll.u32 %s891_s17, 4  ;;  %s31_s16 = int_to_ptr.vmem [resolvable:$true] %s30_s16  ;;  %s929_s18 = int_to_ptr.vmem [resolvable:$true] %s17_s18 }
   0x4   :  { %s796_s21 = scalar_lea.hbm %s1124_s1, 256 }
   0x5   :  { %p797_p0 = scmp.ne.s32.totalorder %s1124_s1, %s796_s21  ;;  %p800_p1 = scmp.lt.u32.totalorder %s796_s21, %s1124_s1 }
   0x7   :  { %p802_p2 = pnand %p800_p1, %p797_p0 }
   0x9   :  { %805 = shalt.err (!%p802_p2)
}
   0xa   :  { %s806_s26 = scalar_lea.vmem %s31_s16, 256  ;;  %p811_p4 = scmp.lt.s32.totalorder %s31_s16, %s31_s16 }
   0xb   :  { %p807_p3 = scmp.ne.s32.totalorder %s31_s16, %s806_s26  ;;  %p812_p5 = scmp.lt.s32.totalorder %s806_s26, %s806_s26 }
   0xd   :  { %p813_p6 = por %p812_p5, %p811_p4 }
   0xf   :  { %p814_p7 = pnand %p813_p6, %p807_p3 }
  0x11   :  { %817 = shalt.err (!%p814_p7)
}
  0x12   :  { %33 = dma.hbm_to_vmem [thread:$0]  %s1124_s1, 256, %s31_s16, [#allocation6]  }
  0x13   :  { %s818_s5 = scalar_lea.hbm %s1123_s0, 256 }
  0x14   :  { %p819_p8 = scmp.ne.s32.totalorder %s1123_s0, %s818_s5  ;;  %p822_p9 = scmp.lt.u32.totalorder %s818_s5, %s1123_s0 }
  0x16   :  { %p824_p10 = pnand %p822_p9, %p819_p8 }
  0x18   :  { %827 = shalt.err (!%p824_p10)
}
  0x19   :  { %s828_s10 = scalar_lea.vmem %s929_s18, 256  ;;  %p833_p12 = scmp.lt.s32.totalorder %s929_s18, %s929_s18 }
  0x1a   :  { %p829_p11 = scmp.ne.s32.totalorder %s929_s18, %s828_s10  ;;  %p834_p13 = scmp.lt.s32.totalorder %s828_s10, %s828_s10 }
  0x1c   :  { %p835_p0 = por %p834_p13, %p833_p12 }
  0x1e   :  { %p836_p1 = pnand %p835_p0, %p829_p11 }
  0x20   :  { %839 = shalt.err (!%p836_p1)
}
  0x21   :  { %s892_s1 = smov 64   ;;  %s893_s11 = smov 4  }
  0x22   :  { %23 = dma.hbm_to_vmem [thread:$0]  %s1123_s0, 256, %s929_s18, [#allocation3], %s892_s1, %s892_s1, %s893_s11  }
  0x23   :  { %s894_s14 = smov [#allocation7]   ;;  %s840_s19 = scalar_lea.hbm %s1126_s3, 1280 }
  0x24   :  { %s41_s15 = sshll.u32 %s894_s14, 4  ;;  %p841_p2 = scmp.ne.s32.totalorder %s1126_s3, %s840_s19  ;;  %s42_s15 = int_to_ptr.vmem [resolvable:$true] %s41_s15 }
  0x25   :  { %p844_p3 = scmp.lt.u32.totalorder %s840_s19, %s1126_s3 }
  0x27   :  { %p846_p4 = pnand %p844_p3, %p841_p2 }
  0x29   :  { %849 = shalt.err (!%p846_p4)
}
  0x2a   :  { %s850_s24 = scalar_lea.vmem %s42_s15, 1280  ;;  %p855_p6 = scmp.lt.s32.totalorder %s42_s15, %s42_s15 }
  0x2b   :  { %p851_p5 = scmp.ne.s32.totalorder %s42_s15, %s850_s24  ;;  %p856_p7 = scmp.lt.s32.totalorder %s850_s24, %s850_s24 }
  0x2d   :  { %p857_p8 = por %p856_p7, %p855_p6 }
  0x2f   :  { %p858_p9 = pnand %p857_p8, %p851_p5 }
  0x31   :  { %861 = shalt.err (!%p858_p9)
}
  0x32   :  { %s895_s0 = smov 256   ;;  %s896_s18 = smov 16  }
  0x33   :  { %47 = dma.hbm_to_vmem [thread:$0]  %s1126_s3, 1280, %s42_s15, [#allocation6], %s895_s0, %s895_s0, %s896_s18  }
  0x34   :  { %884 = dma.done.wait [#allocation3], 256  }
  0x35   :  { %885 = vsyncadd [#allocation3], 4294967040 }
  0x36   :  { %886 = dma.done.wait [#allocation6], 1536  }
  0x37   :  { %887 = vsyncadd [#allocation6], 4294965760  ;;  %v897_v0 = vmov 2   ;;  %v898_v1 = vmov 0   ;;  %v129_v2 = vld [vmem:[#allocation2] sm:$0xf]  ;;  %v62_v10 = vlaneseq }
  0x38   :  { %762 = vset.pattern.permute.xlu1 %v897_v0  ;;  %760 = vset.pattern.permute.xlu0 %v898_v1  ;;  %v899_v3 = vmov 3   ;;  %v900_v4 = vmov 1   ;;  %v901_v5 = vmov 4   ;;  %v902_v6 = vmov 5   ;;  %v277_v7 = vld [vmem:[#allocation2 + $0x4] sm:$0xf] }
  0x39   :  { %200 = vperm.xlu1 %762, %v129_v2   ;;  %148 = vperm.xlu0 %760, %v129_v2   ;;  %v425_v8 = vld [vmem:[#allocation2 + $0x8] sm:$0xf]  ;;  %v573_v9 = vld [vmem:[#allocation2 + $0xc] sm:$0xf]  ;;  %v63_v11 = vshrl.u32 %v62_v10, 7  ;;  %v57_v15 = vld [vmem:[#allocation5] sm:$0xff] }
  0x3a   :  { %v59_v12 = vld [vmem:[%s1125_s2] sm:$0xf]  ;;  %v58_v20 = vld [vmem:[#allocation5 + $0x8] sm:$0xff]  ;;  %v84_v22 = vcombine.high %v57_v15, %v57_v15  ;;  %v93_v24 = vld [vmem:[#allocation7 + $0x8] sm:$0xff]  ;;  %s903_s2 = smov [#allocation8]  }
  0x3b   :  { %v975_v13 = vsub.s32 0, %v63_v11  ;;  %v977_v14 = vsub.s32 1, %v63_v11  ;;  %v60_v16 = vsub.f32 1.0, %v59_v12  ;;  %v92_v17 = vld [vmem:[#allocation7] sm:$0xff]  ;;  %v979_v18 = vsub.s32 2, %v63_v11  ;;  %v248_v54 = vld [vmem:[#allocation7 + $0x10] sm:$0xff] }
  0x3c   :  { %v981_v19 = vsub.s32 3, %v63_v11  ;;  %v117_v27 = vcombine.high %v92_v17, %v92_v17  ;;  %v85_v29 = vcombine.high %v58_v20, %v58_v20  ;;  %v118_v33 = vcombine.high %v93_v24, %v93_v24  ;;  %v249_v55 = vld [vmem:[#allocation7 + $0x18] sm:$0xff]  ;;  %s736_s28 = sshll.u32 %s903_s2, 4  ;;  %s737_s28 = int_to_ptr.vmem [resolvable:$true] %s736_s28 }
  0x3d   :  { %763 = vset.pattern.permute.xlu1 %v899_v3  ;;  %761 = vset.pattern.permute.xlu0 %v900_v4  ;;  %v65_v21 = vrot.slane %v59_v12, %v975_v13  ;;  %v69_v23 = vrot.slane %v59_v12, %v977_v14  ;;  %v986_v25 = vrot.slane %v60_v16, %v975_v13  ;;  %s862_s29 = scalar_lea.vmem %s737_s28, 256  ;;  %p867_p11 = scmp.lt.s32.totalorder %s737_s28, %s737_s28 }
  0x3e   :  { %228 = vperm.xlu1 %763, %v129_v2   ;;  %172 = vperm.xlu0 %761, %v129_v2   ;;  %v989_v26 = vrot.slane %v60_v16, %v977_v14  ;;  %v73_v28 = vrot.slane %v59_v12, %v979_v18  ;;  %v77_v30 = vrot.slane %v59_v12, %v981_v19  ;;  %p863_p10 = scmp.ne.s32.totalorder %s737_s28, %s862_s29  ;;  %p868_p12 = scmp.lt.s32.totalorder %s862_s29, %s862_s29 }
  0x3f   :  { %v994_v31 = vrot.slane %v60_v16, %v979_v18  ;;  %v997_v32 = vrot.slane %v60_v16, %v981_v19  ;;  %v999_v34 = vmul.f32 %v65_v21, %v57_v15  ;;  %v1001_v35 = vmul.f32 %v84_v22, %v69_v23 }
  0x40   :  { %v121_v36 = vmul.f32 %v986_v25, %v92_v17  ;;  %v122_v37 = vmul.f32 %v117_v27, %v989_v26  ;;  %v1005_v38 = vmul.f32 %v73_v28, %v58_v20  ;;  %v1007_v39 = vmul.f32 %v85_v29, %v77_v30  ;;  %p869_p13 = por %p868_p12, %p867_p11 }
  0x41   :  { %v123_v40 = vmul.f32 %v994_v31, %v93_v24  ;;  %v124_v41 = vmul.f32 %v118_v33, %v997_v32 }
  0x42   :  { %764 = vset.pattern.permute.xlu1 %v901_v5  ;;  %765 = vset.pattern.permute.xlu0 %v902_v6  ;;  %v125_v42 = vadd.f32 %v121_v36, %v999_v34  ;;  %v126_v43 = vadd.f32 %v122_v37, %v1001_v35  ;;  %p870_p0 = pnand %p869_p13, %p863_p10 }
  0x43   :  { %240 = vperm.xlu1 %764, %v129_v2   ;;  %251 = vperm.xlu0 %765, %v129_v2   ;;  %v127_v45 = vadd.f32 %v123_v40, %v1005_v38  ;;  %v128_v46 = vadd.f32 %v124_v41, %v1007_v39 }
  0x44   :  { %v186_v48 = vrot.slane %v125_v42, %v979_v18  ;;  %v190_v49 = vrot.slane %v126_v43, %v979_v18  ;;  %v133_v50 = vrot.slane %v125_v42, %v975_v13  ;;  %v137_v51 = vrot.slane %v126_v43, %v975_v13 }
  0x45   :  { %v141_v52 = vrot.slane %v127_v45, %v975_v13  ;;  %v145_v53 = vrot.slane %v128_v46, %v975_v13  ;;  %v158_v56 = vrot.slane %v125_v42, %v977_v14  ;;  %v162_v57 = vrot.slane %v126_v43, %v977_v14 }
  0x46   :  { %v166_v58 = vrot.slane %v127_v45, %v977_v14  ;;  %v170_v59 = vrot.slane %v128_v46, %v977_v14  ;;  %v194_v60 = vrot.slane %v127_v45, %v979_v18  ;;  %v198_v61 = vrot.slane %v128_v46, %v979_v18 }
  0x47   :  { %766 = vset.pattern.permute.xlu1 %v898_v1  ;;  %768 = vset.pattern.permute.xlu0 %v897_v0  ;;  %v214_v62 = vrot.slane %v125_v42, %v981_v19  ;;  %v218_v63 = vrot.slane %v126_v43, %v981_v19  ;;  %v226_v2 = vrot.slane %v128_v46, %v981_v19 }
  0x48   :  { %296 = vperm.xlu1 %766, %v277_v7   ;;  %348 = vperm.xlu0 %768, %v277_v7  }
  0x4c   :  { %767 = vset.pattern.permute.xlu1 %v900_v4  ;;  %771 = vset.pattern.permute.xlu0 %v902_v6 }
  0x4d   :  { %320 = vperm.xlu1 %767, %v277_v7   ;;  %399 = vperm.xlu0 %771, %v277_v7  }
  0x51   :  { %769 = vset.pattern.permute.xlu1 %v899_v3  ;;  %774 = vset.pattern.permute.xlu0 %v897_v0 }
  0x52   :  { %376 = vperm.xlu1 %769, %v277_v7   ;;  %496 = vperm.xlu0 %774, %v425_v8  }
  0x56   :  { %770 = vset.pattern.permute.xlu1 %v901_v5  ;;  %777 = vset.pattern.permute.xlu0 %v902_v6 }
  0x57   :  { %388 = vperm.xlu1 %770, %v277_v7   ;;  %547 = vperm.xlu0 %777, %v425_v8  }
  0x5b   :  { %772 = vset.pattern.permute.xlu1 %v898_v1  ;;  %780 = vset.pattern.permute.xlu0 %v897_v0 }
  0x5c   :  { %444 = vperm.xlu1 %772, %v425_v8   ;;  %644 = vperm.xlu0 %780, %v573_v9  }
  0x60   :  { %773 = vset.pattern.permute.xlu1 %v900_v4  ;;  %783 = vset.pattern.permute.xlu0 %v902_v6 }
  0x61   :  { %468 = vperm.xlu1 %773, %v425_v8   ;;  %695 = vperm.xlu0 %783, %v573_v9  }
  0x65   :  { %775 = vset.pattern.permute.xlu1 %v899_v3 }
  0x66   :  { %524 = vperm.xlu1 %775, %v425_v8  }
  0x6a   :  { %776 = vset.pattern.permute.xlu1 %v901_v5 }
  0x6b   :  { %536 = vperm.xlu1 %776, %v425_v8  }
  0x6f   :  { %778 = vset.pattern.permute.xlu1 %v898_v1  ;;  %v222_v1 = vrot.slane %v127_v45, %v981_v19 }
  0x70   :  { %592 = vperm.xlu1 %778, %v573_v9  }
  0x74   :  { %779 = vset.pattern.permute.xlu1 %v900_v4  ;;  %v256_v4 = vcombine.high %v248_v54, %v248_v54 }
  0x75   :  { %616 = vperm.xlu1 %779, %v573_v9  }
  0x79   :  { %781 = vset.pattern.permute.xlu1 %v899_v3 }
  0x7a   :  { %672 = vperm.xlu1 %781, %v573_v9  }
  0x7e   :  { %782 = vset.pattern.permute.xlu1 %v901_v5  ;;  %v257_v5 = vcombine.high %v249_v55, %v249_v55 }
  0x7f   :  { %684 = vperm.xlu1 %782, %v573_v9  }
  0xb8   :  { %v201_v44 = vpop.permute.xlu1 %200  ;;  %v149_v47 = vpop.permute.xlu0 %148 }
  0xb9   :  { %v151_v6 = vmul.f32 %v149_v47, %v133_v50  ;;  %v152_v7 = vmul.f32 %v149_v47, %v137_v51  ;;  %v153_v8 = vmul.f32 %v149_v47, %v141_v52  ;;  %v154_v9 = vmul.f32 %v149_v47, %v145_v53 }
  0xba   :  { %v203_v16 = vmul.f32 %v201_v44, %v186_v48  ;;  %v204_v17 = vmul.f32 %v201_v44, %v190_v49  ;;  %v205_v20 = vmul.f32 %v201_v44, %v194_v60  ;;  %v206_v21 = vmul.f32 %v201_v44, %v198_v61 }
  0xbd   :  { %v229_v0 = vpop.permute.xlu1 %228  ;;  %v173_v3 = vpop.permute.xlu0 %172 }
  0xbe   :  { %v175_v10 = vmul.f32 %v173_v3, %v158_v56  ;;  %v176_v11 = vmul.f32 %v173_v3, %v162_v57  ;;  %v177_v12 = vmul.f32 %v173_v3, %v166_v58  ;;  %v178_v15 = vmul.f32 %v173_v3, %v170_v59 }
  0xbf   :  { %v231_v28 = vmul.f32 %v229_v0, %v214_v62  ;;  %v232_v29 = vmul.f32 %v229_v0, %v218_v63  ;;  %v233_v30 = vmul.f32 %v229_v0, %v222_v1  ;;  %v234_v33 = vmul.f32 %v229_v0, %v226_v2  ;;  %v396_v1 = vld [vmem:[#allocation7 + $0x20] sm:$0xff]  ;;  %v397_v2 = vld [vmem:[#allocation7 + $0x28] sm:$0xff] }
  0xc0   :  { %v179_v22 = vadd.f32 %v175_v10, %v151_v6  ;;  %v180_v23 = vadd.f32 %v176_v11, %v152_v7  ;;  %v181_v24 = vadd.f32 %v177_v12, %v153_v8  ;;  %v182_v27 = vadd.f32 %v178_v15, %v154_v9 }
  0xc1   :  { %v404_v8 = vcombine.high %v396_v1, %v396_v1  ;;  %v405_v9 = vcombine.high %v397_v2, %v397_v2 }
  0xc2   :  { %v241_v36 = vpop.permute.xlu1 %240  ;;  %v252_v37 = vpop.permute.xlu0 %251  ;;  %v207_v40 = vadd.f32 %v203_v16, %v179_v22  ;;  %v208_v41 = vadd.f32 %v204_v17, %v180_v23  ;;  %v209_v42 = vadd.f32 %v205_v20, %v181_v24  ;;  %v210_v43 = vadd.f32 %v206_v21, %v182_v27 }
  0xc3   :  { %v260_v45 = vmul.f32 %v252_v37, %v248_v54  ;;  %v261_v46 = vmul.f32 %v256_v4, %v252_v37  ;;  %v262_v47 = vmul.f32 %v252_v37, %v249_v55  ;;  %v263_v48 = vmul.f32 %v257_v5, %v252_v37 }
  0xc4   :  { %v235_v49 = vadd.f32 %v231_v28, %v207_v40  ;;  %v236_v44 = vadd.f32 %v232_v29, %v208_v41  ;;  %v237_v50 = vadd.f32 %v233_v30, %v209_v42  ;;  %v238_v51 = vadd.f32 %v234_v33, %v210_v43 }
  0xc6   :  { %v243_v52 = vadd.f32 %v241_v36, %v235_v49  ;;  %v244_v53 = vadd.f32 %v241_v36, %v236_v44  ;;  %v245_v56 = vadd.f32 %v241_v36, %v237_v50  ;;  %v246_v57 = vadd.f32 %v241_v36, %v238_v51 }
  0xc7   :  { %v297_v58 = vpop.permute.xlu1 %296  ;;  %v349_v37 = vpop.permute.xlu0 %348 }
  0xc8   :  { %v264_v59 = vadd.f32 %v260_v45, %v243_v52  ;;  %v265_v60 = vadd.f32 %v261_v46, %v244_v53  ;;  %v266_v61 = vadd.f32 %v262_v47, %v245_v56  ;;  %v267_v62 = vadd.f32 %v263_v48, %v246_v57 }
  0xca   :  { %v268_v63 = vmul.f32 %v264_v59, %v986_v25  ;;  %v269_v54 = vmul.f32 %v265_v60, %v989_v26  ;;  %v270_v55 = vmul.f32 %v266_v61, %v994_v31  ;;  %v271_v0 = vmul.f32 %v267_v62, %v997_v32 }
  0xcc   :  { %v321_v3 = vpop.permute.xlu1 %320  ;;  %v272_v4 = vadd.f32 %v268_v63, %v999_v34  ;;  %v273_v5 = vadd.f32 %v269_v54, %v1001_v35  ;;  %v274_v6 = vadd.f32 %v270_v55, %v1005_v38  ;;  %v275_v7 = vadd.f32 %v271_v0, %v1007_v39  ;;  %v400_v59 = vpop.permute.xlu0 %399 }
  0xce   :  { %v281_v10 = vrot.slane %v272_v4, %v975_v13  ;;  %v285_v11 = vrot.slane %v273_v5, %v975_v13  ;;  %v289_v12 = vrot.slane %v274_v6, %v975_v13  ;;  %v293_v15 = vrot.slane %v275_v7, %v975_v13 }
  0xcf   :  { %v306_v16 = vrot.slane %v272_v4, %v977_v14  ;;  %v310_v17 = vrot.slane %v273_v5, %v977_v14  ;;  %v314_v20 = vrot.slane %v274_v6, %v977_v14  ;;  %v318_v21 = vrot.slane %v275_v7, %v977_v14 }
  0xd0   :  { %v299_v22 = vmul.f32 %v297_v58, %v281_v10  ;;  %v300_v23 = vmul.f32 %v297_v58, %v285_v11  ;;  %v301_v24 = vmul.f32 %v297_v58, %v289_v12  ;;  %v302_v27 = vmul.f32 %v297_v58, %v293_v15 }
  0xd1   :  { %v377_v28 = vpop.permute.xlu1 %376  ;;  %v323_v29 = vmul.f32 %v321_v3, %v306_v16  ;;  %v324_v30 = vmul.f32 %v321_v3, %v310_v17  ;;  %v325_v33 = vmul.f32 %v321_v3, %v314_v20  ;;  %v326_v36 = vmul.f32 %v321_v3, %v318_v21 }
  0xd2   :  { %v334_v40 = vrot.slane %v272_v4, %v979_v18  ;;  %v338_v41 = vrot.slane %v273_v5, %v979_v18  ;;  %v342_v42 = vrot.slane %v274_v6, %v979_v18  ;;  %v346_v43 = vrot.slane %v275_v7, %v979_v18 }
  0xd3   :  { %v327_v45 = vadd.f32 %v323_v29, %v299_v22  ;;  %v328_v46 = vadd.f32 %v324_v30, %v300_v23  ;;  %v329_v47 = vadd.f32 %v325_v33, %v301_v24  ;;  %v330_v48 = vadd.f32 %v326_v36, %v302_v27  ;;  %v545_v33 = vld [vmem:[#allocation7 + $0x38] sm:$0xff] }
  0xd4   :  { %v351_v49 = vmul.f32 %v349_v37, %v334_v40  ;;  %v352_v44 = vmul.f32 %v349_v37, %v338_v41  ;;  %v353_v50 = vmul.f32 %v349_v37, %v342_v42  ;;  %v354_v51 = vmul.f32 %v349_v37, %v346_v43 }
  0xd5   :  { %v362_v52 = vrot.slane %v272_v4, %v981_v19  ;;  %v366_v53 = vrot.slane %v273_v5, %v981_v19  ;;  %v370_v56 = vrot.slane %v274_v6, %v981_v19  ;;  %v374_v57 = vrot.slane %v275_v7, %v981_v19 }
  0xd6   :  { %v389_v58 = vpop.permute.xlu1 %388  ;;  %v355_v60 = vadd.f32 %v351_v49, %v327_v45  ;;  %v356_v61 = vadd.f32 %v352_v44, %v328_v46  ;;  %v357_v62 = vadd.f32 %v353_v50, %v329_v47  ;;  %v358_v63 = vadd.f32 %v354_v51, %v330_v48 }
  0xd7   :  { %v379_v54 = vmul.f32 %v377_v28, %v362_v52  ;;  %v380_v55 = vmul.f32 %v377_v28, %v366_v53  ;;  %v381_v0 = vmul.f32 %v377_v28, %v370_v56  ;;  %v382_v3 = vmul.f32 %v377_v28, %v374_v57  ;;  %v544_v28 = vld [vmem:[#allocation7 + $0x30] sm:$0xff] }
  0xd8   :  { %v408_v10 = vmul.f32 %v400_v59, %v396_v1  ;;  %v409_v11 = vmul.f32 %v404_v8, %v400_v59  ;;  %v410_v12 = vmul.f32 %v400_v59, %v397_v2  ;;  %v411_v4 = vmul.f32 %v405_v9, %v400_v59 }
  0xd9   :  { %v383_v15 = vadd.f32 %v379_v54, %v355_v60  ;;  %v384_v5 = vadd.f32 %v380_v55, %v356_v61  ;;  %v385_v16 = vadd.f32 %v381_v0, %v357_v62  ;;  %v386_v6 = vadd.f32 %v382_v3, %v358_v63  ;;  %v497_v63 = vpop.permute.xlu0 %496 }
  0xda   :  { %v552_v42 = vcombine.high %v544_v28, %v544_v28  ;;  %v553_v43 = vcombine.high %v545_v33, %v545_v33 }
  0xdb   :  { %v445_v17 = vpop.permute.xlu1 %444  ;;  %v391_v7 = vadd.f32 %v389_v58, %v383_v15  ;;  %v392_v20 = vadd.f32 %v389_v58, %v384_v5  ;;  %v393_v21 = vadd.f32 %v389_v58, %v385_v16  ;;  %v394_v22 = vadd.f32 %v389_v58, %v386_v6 }
  0xdd   :  { %v412_v23 = vadd.f32 %v408_v10, %v391_v7  ;;  %v413_v24 = vadd.f32 %v409_v11, %v392_v20  ;;  %v414_v27 = vadd.f32 %v410_v12, %v393_v21  ;;  %v415_v29 = vadd.f32 %v411_v4, %v394_v22 }
  0xdf   :  { %v416_v30 = vmul.f32 %v412_v23, %v986_v25  ;;  %v417_v1 = vmul.f32 %v413_v24, %v989_v26  ;;  %v418_v2 = vmul.f32 %v414_v27, %v994_v31  ;;  %v419_v8 = vmul.f32 %v415_v29, %v997_v32  ;;  %v548_v23 = vpop.permute.xlu0 %547 }
  0xe0   :  { %v469_v9 = vpop.permute.xlu1 %468 }
  0xe1   :  { %v420_v36 = vadd.f32 %v416_v30, %v999_v34  ;;  %v421_v37 = vadd.f32 %v417_v1, %v1001_v35  ;;  %v422_v40 = vadd.f32 %v418_v2, %v1005_v38  ;;  %v423_v41 = vadd.f32 %v419_v8, %v1007_v39 }
  0xe3   :  { %v429_v45 = vrot.slane %v420_v36, %v975_v13  ;;  %v433_v46 = vrot.slane %v421_v37, %v975_v13  ;;  %v437_v47 = vrot.slane %v422_v40, %v975_v13  ;;  %v441_v48 = vrot.slane %v423_v41, %v975_v13 }
  0xe4   :  { %v454_v49 = vrot.slane %v420_v36, %v977_v14  ;;  %v458_v44 = vrot.slane %v421_v37, %v977_v14  ;;  %v462_v50 = vrot.slane %v422_v40, %v977_v14  ;;  %v466_v51 = vrot.slane %v423_v41, %v977_v14 }
  0xe5   :  { %v525_v52 = vpop.permute.xlu1 %524  ;;  %v447_v53 = vmul.f32 %v445_v17, %v429_v45  ;;  %v448_v56 = vmul.f32 %v445_v17, %v433_v46  ;;  %v449_v57 = vmul.f32 %v445_v17, %v437_v47  ;;  %v450_v58 = vmul.f32 %v445_v17, %v441_v48 }
  0xe6   :  { %v471_v59 = vmul.f32 %v469_v9, %v454_v49  ;;  %v472_v60 = vmul.f32 %v469_v9, %v458_v44  ;;  %v473_v61 = vmul.f32 %v469_v9, %v462_v50  ;;  %v474_v62 = vmul.f32 %v469_v9, %v466_v51 }
  0xe7   :  { %v482_v54 = vrot.slane %v420_v36, %v979_v18  ;;  %v486_v55 = vrot.slane %v421_v37, %v979_v18  ;;  %v490_v0 = vrot.slane %v422_v40, %v979_v18  ;;  %v494_v3 = vrot.slane %v423_v41, %v979_v18 }
  0xe8   :  { %v475_v10 = vadd.f32 %v471_v59, %v447_v53  ;;  %v476_v11 = vadd.f32 %v472_v60, %v448_v56  ;;  %v477_v12 = vadd.f32 %v473_v61, %v449_v57  ;;  %v478_v4 = vadd.f32 %v474_v62, %v450_v58 }
  0xe9   :  { %v499_v15 = vmul.f32 %v497_v63, %v482_v54  ;;  %v500_v5 = vmul.f32 %v497_v63, %v486_v55  ;;  %v501_v16 = vmul.f32 %v497_v63, %v490_v0  ;;  %v502_v6 = vmul.f32 %v497_v63, %v494_v3 }
  0xea   :  { %v510_v17 = vrot.slane %v420_v36, %v981_v19  ;;  %v514_v7 = vrot.slane %v421_v37, %v981_v19  ;;  %v518_v20 = vrot.slane %v422_v40, %v981_v19  ;;  %v522_v21 = vrot.slane %v423_v41, %v981_v19  ;;  %v537_v22 = vpop.permute.xlu1 %536 }
  0xeb   :  { %v503_v24 = vadd.f32 %v499_v15, %v475_v10  ;;  %v504_v27 = vadd.f32 %v500_v5, %v476_v11  ;;  %v505_v29 = vadd.f32 %v501_v16, %v477_v12  ;;  %v506_v30 = vadd.f32 %v502_v6, %v478_v4 }
  0xec   :  { %v527_v1 = vmul.f32 %v525_v52, %v510_v17  ;;  %v528_v2 = vmul.f32 %v525_v52, %v514_v7  ;;  %v529_v8 = vmul.f32 %v525_v52, %v518_v20  ;;  %v530_v9 = vmul.f32 %v525_v52, %v522_v21  ;;  %v693_v52 = vld [vmem:[#allocation7 + $0x48] sm:$0xff] }
  0xed   :  { %v556_v45 = vmul.f32 %v548_v23, %v544_v28  ;;  %v557_v46 = vmul.f32 %v552_v42, %v548_v23  ;;  %v558_v47 = vmul.f32 %v548_v23, %v545_v33  ;;  %v559_v36 = vmul.f32 %v553_v43, %v548_v23  ;;  %v692_v43 = vld [vmem:[#allocation7 + $0x40] sm:$0xff] }
  0xee   :  { %v531_v48 = vadd.f32 %v527_v1, %v503_v24  ;;  %v532_v37 = vadd.f32 %v528_v2, %v504_v27  ;;  %v533_v49 = vadd.f32 %v529_v8, %v505_v29  ;;  %v534_v40 = vadd.f32 %v530_v9, %v506_v30  ;;  %v645_v29 = vpop.permute.xlu0 %644 }
  0xef   :  { %v593_v53 = vpop.permute.xlu1 %592  ;;  %v700_v0 = vcombine.high %v692_v43, %v692_v43  ;;  %v701_v3 = vcombine.high %v693_v52, %v693_v52 }
  0xf0   :  { %v539_v44 = vadd.f32 %v537_v22, %v531_v48  ;;  %v540_v41 = vadd.f32 %v537_v22, %v532_v37  ;;  %v541_v50 = vadd.f32 %v537_v22, %v533_v49  ;;  %v542_v51 = vadd.f32 %v537_v22, %v534_v40 }
  0xf2   :  { %v560_v56 = vadd.f32 %v556_v45, %v539_v44  ;;  %v561_v57 = vadd.f32 %v557_v46, %v540_v41  ;;  %v562_v58 = vadd.f32 %v558_v47, %v541_v50  ;;  %v563_v59 = vadd.f32 %v559_v36, %v542_v51  ;;  %v696_v50 = vpop.permute.xlu0 %695 }
  0xf4   :  { %v564_v60 = vmul.f32 %v560_v56, %v986_v25  ;;  %v565_v28 = vmul.f32 %v561_v57, %v989_v26  ;;  %v566_v33 = vmul.f32 %v562_v58, %v994_v31  ;;  %v567_v42 = vmul.f32 %v563_v59, %v997_v32  ;;  %v617_v55 = vpop.permute.xlu1 %616 }
  0xf6   :  { %v568_v61 = vadd.f32 %v564_v60, %v999_v34  ;;  %v569_v62 = vadd.f32 %v565_v28, %v1001_v35  ;;  %v570_v63 = vadd.f32 %v566_v33, %v1005_v38  ;;  %v571_v54 = vadd.f32 %v567_v42, %v1007_v39 }
  0xf7   :  { %v704_v33 = vmul.f32 %v696_v50, %v692_v43  ;;  %v705_v42 = vmul.f32 %v700_v0, %v696_v50 }
  0xf8   :  { %v577_v10 = vrot.slane %v568_v61, %v975_v13  ;;  %v581_v11 = vrot.slane %v569_v62, %v975_v13  ;;  %v585_v12 = vrot.slane %v570_v63, %v975_v13  ;;  %v589_v4 = vrot.slane %v571_v54, %v975_v13 }
  0xf9   :  { %v602_v15 = vrot.slane %v568_v61, %v977_v14  ;;  %v606_v5 = vrot.slane %v569_v62, %v977_v14  ;;  %v610_v16 = vrot.slane %v570_v63, %v977_v14  ;;  %v614_v6 = vrot.slane %v571_v54, %v977_v14  ;;  %v673_v8 = vpop.permute.xlu1 %672 }
  0xfa   :  { %v595_v17 = vmul.f32 %v593_v53, %v577_v10  ;;  %v596_v7 = vmul.f32 %v593_v53, %v581_v11  ;;  %v597_v20 = vmul.f32 %v593_v53, %v585_v12  ;;  %v598_v21 = vmul.f32 %v593_v53, %v589_v4 }
  0xfb   :  { %v619_v22 = vmul.f32 %v617_v55, %v602_v15  ;;  %v620_v23 = vmul.f32 %v617_v55, %v606_v5  ;;  %v621_v24 = vmul.f32 %v617_v55, %v610_v16  ;;  %v622_v27 = vmul.f32 %v617_v55, %v614_v6 }
  0xfc   :  { %v630_v30 = vrot.slane %v568_v61, %v979_v18  ;;  %v634_v13 = vrot.slane %v569_v62, %v979_v18  ;;  %v638_v1 = vrot.slane %v570_v63, %v979_v18  ;;  %v642_v2 = vrot.slane %v571_v54, %v979_v18 }
  0xfd   :  { %v623_v9 = vadd.f32 %v619_v22, %v595_v17  ;;  %v624_v14 = vadd.f32 %v620_v23, %v596_v7  ;;  %v625_v45 = vadd.f32 %v621_v24, %v597_v20  ;;  %v626_v46 = vadd.f32 %v622_v27, %v598_v21 }
  0xfe   :  { %v647_v47 = vmul.f32 %v645_v29, %v630_v30  ;;  %v648_v36 = vmul.f32 %v645_v29, %v634_v13  ;;  %v649_v48 = vmul.f32 %v645_v29, %v638_v1  ;;  %v650_v37 = vmul.f32 %v645_v29, %v642_v2  ;;  %v685_v28 = vpop.permute.xlu1 %684 }
  0xff   :  { %v658_v49 = vrot.slane %v568_v61, %v981_v19  ;;  %v662_v40 = vrot.slane %v569_v62, %v981_v19  ;;  %v666_v44 = vrot.slane %v570_v63, %v981_v19  ;;  %v670_v41 = vrot.slane %v571_v54, %v981_v19 }
 0x100   :  { %v651_v51 = vadd.f32 %v647_v47, %v623_v9  ;;  %v652_v18 = vadd.f32 %v648_v36, %v624_v14  ;;  %v653_v53 = vadd.f32 %v649_v48, %v625_v45  ;;  %v654_v56 = vadd.f32 %v650_v37, %v626_v46 }
 0x101   :  { %v675_v57 = vmul.f32 %v673_v8, %v658_v49  ;;  %v676_v58 = vmul.f32 %v673_v8, %v662_v40  ;;  %v677_v59 = vmul.f32 %v673_v8, %v666_v44  ;;  %v678_v60 = vmul.f32 %v673_v8, %v670_v41 }
 0x102   :  { %v706_v55 = vmul.f32 %v696_v50, %v693_v52  ;;  %v707_v61 = vmul.f32 %v701_v3, %v696_v50 }
 0x103   :  { %v679_v10 = vadd.f32 %v675_v57, %v651_v51  ;;  %v680_v62 = vadd.f32 %v676_v58, %v652_v18  ;;  %v681_v11 = vadd.f32 %v677_v59, %v653_v53  ;;  %v682_v63 = vadd.f32 %v678_v60, %v654_v56 }
 0x105   :  { %v687_v12 = vadd.f32 %v685_v28, %v679_v10  ;;  %v688_v19 = vadd.f32 %v685_v28, %v680_v62  ;;  %v689_v54 = vadd.f32 %v685_v28, %v681_v11  ;;  %v690_v4 = vadd.f32 %v685_v28, %v682_v63 }
 0x107   :  { %v708_v15 = vadd.f32 %v704_v33, %v687_v12  ;;  %v709_v5 = vadd.f32 %v705_v42, %v688_v19  ;;  %v710_v16 = vadd.f32 %v706_v55, %v689_v54  ;;  %v711_v6 = vadd.f32 %v707_v61, %v690_v4 }
 0x109   :  { %v712_v17 = vmul.f32 %v708_v15, %v986_v25  ;;  %v713_v7 = vmul.f32 %v709_v5, %v989_v26  ;;  %v714_v43 = vmul.f32 %v710_v16, %v994_v31  ;;  %v715_v52 = vmul.f32 %v711_v6, %v997_v32 }
 0x10b   :  { %v716_v0 = vadd.f32 %v712_v17, %v999_v34  ;;  %v717_v3 = vadd.f32 %v713_v7, %v1001_v35  ;;  %v718_v20 = vadd.f32 %v714_v43, %v1005_v38  ;;  %v719_v21 = vadd.f32 %v715_v52, %v1007_v39 }
 0x10d   :  { %v724_v22 = vcombine.low %v716_v0, %v717_v3  ;;  %v725_v23 = vcombine.low %v718_v20, %v719_v21 }
 0x10f   :  { %728 = vst [vmem:[#allocation8] sm:$0xff] %v724_v22  ;;  %729 = vst [vmem:[#allocation8 + $0x8] sm:$0xff] %v725_v23 }
 0x110   :  { %873 = shalt.err (!%p870_p0)
}
 0x111   :  { %s874_s6 = scalar_lea.hbm %s1127_s4, 256 }
 0x112   :  { %p875_p1 = scmp.ne.s32.totalorder %s1127_s4, %s874_s6  ;;  %p878_p2 = scmp.lt.u32.totalorder %s874_s6, %s1127_s4 }
 0x114   :  { %p880_p3 = pnand %p878_p2, %p875_p1 }
 0x116   :  { %883 = shalt.err (!%p880_p3)
}
 0x117   :  { %739 = dma.vmem_to_hbm [thread:$0]  %s737_s28, 256, %s1127_s4, [#allocation4]  }
 0x118   :  { %888 = dma.done.wait [#allocation4], 256  }
 0x119   :  { %889 = vsyncadd [#allocation4], 4294967040 }
 0x11a   :  { %743 = vsyncpa [#allocation3], 1 }
 0x11b   :  { %744 = vsyncpa [#allocation6], 1 }
 0x11c   :  { %745 = vsyncpa [#allocation4], 1 }

</bundles_post_ra>
